<compile_context>
chip_gen: v7x
topology: tpu7x:2x2x1
jax: 0.10.0
libtpu: 0.0.40
codegen_flags: <defaults>
</compile_context>

<pallas_src>
import jax
import jax.numpy as jnp
from jax.experimental import pallas as pl
from jax.experimental.pallas import tpu as pltpu


# ---------------------------------------------------------------------------
# Kernel bodies
# ---------------------------------------------------------------------------
def _softmax_last(s):
    """Softmax over the last (lane) axis; denominator via the EUP reciprocal."""
    m = jnp.max(s, axis=-1, keepdims=True)
    e = jnp.exp(s - m)
    return e * pl.reciprocal(jnp.sum(e, axis=-1, keepdims=True), approx=True)


def _linear_relu_conv_relu(x2d, wd, bd, cmat, bconv):
    """Linear(T1->T2) + ReLU + Conv1d(1,1,K,pad=(K-1)//2) + ReLU.

    The conv is a banded (or block-diagonal) matmul built once in the wrapper,
    so it rides the otherwise idle MXU with no pad/concat VMEM traffic.
    """
    z = jnp.maximum(jnp.dot(x2d, wd, preferred_element_type=jnp.float32) + bd, 0.0)
    y = jnp.dot(z, cmat, preferred_element_type=jnp.float32) + bconv
    return jnp.maximum(y, 0.0)


def _ffn_dense_kernel(x_ref, wbd_ref, bbd_ref, cbd_ref, bconv_ref, y_ref):
    # x: (bblk, N*T1), lane-dense.  Block-diagonal weights keep nodes separate
    # and make the (bblk, N*T2) result store a full-lane unmasked vst.
    y_ref[...] = _linear_relu_conv_relu(
        x_ref[...], wbd_ref[...], bbd_ref[...], cbd_ref[...], bconv_ref[0])


def _ffn_rows_kernel(x_ref, wd_ref, bd_ref, cmat_ref, bconv_ref, y_ref):
    # Row-major fallback for large N*T1 / N*T2: x (bblk, N, T1) -> rows.
    x = x_ref[...]
    bblk, n, t1 = x.shape
    y_ref[...] = _linear_relu_conv_relu(
        x.reshape(bblk * n, t1), wd_ref[...], bd_ref[...], cmat_ref[...],
        bconv_ref[0])


def _fused_kernel(x_ref, w1_ref, w23_ref, vst_ref, bst_ref,
                  wd_ref, bd_ref, cmat_ref, bconv_ref, y_ref, st_ref):
    x = x_ref[...]                                        # (bblk, N, T1)
    bblk, n, t1 = x.shape

    # ---- SpatialAtt: rank-1 score in the transposed layout -----------------
    #   _S[b,r,c] = u[b,r] * v[b,c] + bs[r,c]
    #   u = x @ W1,  v = x @ (W2*W3)          (two lane reductions)
    # Working with S^T keeps both Softmax(dim=1) reductions on the lane axis
    # and turns Vs @ S into a single (bblk*N, N) @ (N, N) matmul.
    u = jnp.sum(x * w1_ref[...], axis=-1)                 # (bblk, N)
    vk = jnp.sum(x * w23_ref[...], axis=-1, keepdims=True)  # (bblk, N, 1)
    at = vk * u[:, None, :] + bst_ref[...][None]          # _S^T[b,c,r]
    s1t = _softmax_last(at).reshape(bblk * n, n)          # Softmax(dim=1) of _S
    bt = jnp.dot(s1t, vst_ref[...], preferred_element_type=jnp.float32)
    st_ref[...] = _softmax_last(bt)                       # rows of S^T

    # ---- Linear + ReLU + Conv1d + ReLU -------------------------------------
    y_ref[...] = _linear_relu_conv_relu(
        x.reshape(bblk * n, t1), wd_ref[...], bd_ref[...], cmat_ref[...],
        bconv_ref[0])


# ---------------------------------------------------------------------------
# Wrapper-side weight preparation / tiling heuristics (layout plumbing)
# ---------------------------------------------------------------------------
def _build_conv_matrix(conv_w, K, T2):
    """Banded [T2,T2] matrix M so that (z @ M)[m,t] == Conv1d(1,1,K,pad)(z)[m,t].

    NOTE: only K of T2 diagonals are nonzero, so the MXU does ~T2/K x the
    minimal conv work -- fine while the MXU is idle at small T2.  For
    T2 >~ 256 switch to K pltpu.roll-shifted adds (XLU/VPU) and drop the
    T2^2 buffer.
    """
    pad = (K - 1) // 2
    w = conv_w.reshape(K).astype(jnp.float32)
    j = jnp.arange(T2)[:, None]
    t = jnp.arange(T2)[None, :]
    k = j - t + pad
    valid = (k >= 0) & (k < K)
    return jnp.where(valid, w[jnp.clip(k, 0, K - 1)], 0.0)


def _prep_ffn_weights(params, K, T2, compute_dtype):
    wd_t = params["dummy_w"].T.astype(compute_dtype)            # (T1, T2)
    bd = params["dummy_b"].reshape(1, T2).astype(jnp.float32)
    cmat = _build_conv_matrix(params["conv_w"], K, T2).astype(compute_dtype)
    bconv = params["conv_b"].reshape(1).astype(jnp.float32)
    return wd_t, bd, cmat, bconv


def _choose_bblk(B, N, T1, T2, extra_lanes=0):
    """Batch tile.  Tiny problems: one grid step (per-step overhead dominates,
    nothing to pipeline).  Larger problems: a multiple of 8 dividing B that
    targets >=8 pipelined grid steps and a bounded per-step VMEM footprint
    (sized conservatively for v7x's 64 MiB physical VMEM)."""
    if 4 * B * N * T1 <= (2 << 20) or B < 16:
        return B
    per_batch = 4 * N * (T1 + T2 + extra_lanes)
    by_vmem = max(8, ((4 << 20) // max(per_batch, 1)) // 8 * 8)
    by_steps = max(8, ((B // 8) // 8) * 8)
    bblk = min(B, by_vmem, by_steps)
    while bblk > 8 and B % bblk:
        bblk -= 8
    return bblk if (bblk >= 8 and B % bblk == 0) else B


def _sanitize_bblk(B, bblk):
    if bblk is None or bblk >= B:
        return B
    if B % bblk or bblk % 8:
        return B
    return bblk


def _compiler_params(grid_steps, block_bytes, weight_bytes):
    # Double-buffered blocks + resident weights with headroom; never below the
    # default scoped VMEM limit, never above v7x physical VMEM (64 MiB).
    est = 4 * block_bytes + 2 * weight_bytes
    return pltpu.CompilerParams(
        # Batches are independent -> let multi-TensorCore chips (v7x) shard
        # the grid; with a single step it is just a sequential loop anyway.
        dimension_semantics=("parallel",) if grid_steps > 1 else ("arbitrary",),
        vmem_limit_bytes=int(min(64 << 20, max(32 << 20, est))),
    )


# ---------------------------------------------------------------------------
# pallas_call wrappers
# ---------------------------------------------------------------------------
def _ffn_dense_call(x_dense, wbd, bbd, cbd, bconv, *, bblk):
    B, l_in = x_dense.shape
    l_out = cbd.shape[1]
    grid = (B // bblk,)
    block_bytes = 4 * bblk * (l_in + l_out)
    weight_bytes = 4 * (wbd.size + bbd.size + cbd.size)
    # NOTE: the constant-index weight specs could use pipeline_mode=
    # pl.Buffered(1) to drop their second VMEM buffer; negligible at these
    # weight sizes so the default pipelining is kept.
    return pl.pallas_call(
        _ffn_dense_kernel,
        out_shape=jax.ShapeDtypeStruct((B, l_out), jnp.float32),
        grid_spec=pltpu.PrefetchScalarGridSpec(
            num_scalar_prefetch=0,
            grid=grid,
            in_specs=[
                pl.BlockSpec((bblk, l_in), lambda b: (b, 0)),            # x
                pl.BlockSpec(wbd.shape, lambda b: (0, 0)),               # blkdiag Wd^T
                pl.BlockSpec(bbd.shape, lambda b: (0, 0)),               # tiled bd
                pl.BlockSpec(cbd.shape, lambda b: (0, 0)),               # blkdiag conv
                pl.BlockSpec(memory_space=pltpu.MemorySpace.SMEM),       # conv bias
            ],
            out_specs=pl.BlockSpec((bblk, l_out), lambda b: (b, 0)),
        ),
        compiler_params=_compiler_params(grid[0], block_bytes, weight_bytes),
    )(x_dense, wbd, bbd, cbd, bconv)


def _ffn_rows_call(x3, wd_t, bd, cmat, bconv, *, bblk):
    B, N, T1 = x3.shape
    T2 = cmat.shape[1]
    grid = (B // bblk,)
    block_bytes = 4 * bblk * N * (T1 + T2)
    weight_bytes = 4 * (wd_t.size + bd.size + cmat.size)
    return pl.pallas_call(
        _ffn_rows_kernel,
        out_shape=jax.ShapeDtypeStruct((B * N, T2), jnp.float32),
        grid_spec=pltpu.PrefetchScalarGridSpec(
            num_scalar_prefetch=0,
            grid=grid,
            in_specs=[
                pl.BlockSpec((bblk, N, T1), lambda b: (b, 0, 0)),        # x
                pl.BlockSpec((T1, T2), lambda b: (0, 0)),                # Wd^T
                pl.BlockSpec((1, T2), lambda b: (0, 0)),                 # bd
                pl.BlockSpec((T2, T2), lambda b: (0, 0)),                # conv band
                pl.BlockSpec(memory_space=pltpu.MemorySpace.SMEM),       # conv bias
            ],
            out_specs=pl.BlockSpec((bblk * N, T2), lambda b: (b, 0)),
        ),
        compiler_params=_compiler_params(grid[0], block_bytes, weight_bytes),
    )(x3, wd_t, bd, cmat, bconv)


def stblock_ffn(X, params, *, K, T2, bblk=None, compute_dtype=jnp.float32,
                dense=None):
    """X_new only (the value STBlock_noGCN.forward returns).  The attention
    branch is skipped entirely -- X_new has no data dependence on it."""
    B, N, C, T1 = X.shape
    assert C == 1, "STBlock_noGCN uses a single channel (C == 1)."
    wd_t, bd, cmat, bconv = _prep_ffn_weights(params, K, T2, compute_dtype)
    if dense is None:
        # Lane-dense block-diagonal formulation only while the inflated
        # weights stay tiny; otherwise fall back to the row-major formulation.
        dense = (N * T1 <= 512) and (N * T2 <= 512)
    if bblk is None:
        bblk = _choose_bblk(B, N, T1, T2)
    bblk = _sanitize_bblk(B, bblk)

    if dense:
        x_in = X.reshape(B, N * T1).astype(compute_dtype)            # lane-dense
        eye = jnp.eye(N, dtype=wd_t.dtype)
        wbd = jnp.kron(eye, wd_t)                                     # (N*T1, N*T2)
        bbd = jnp.tile(bd, (1, N))                                    # (1, N*T2)
        cbd = jnp.kron(jnp.eye(N, dtype=cmat.dtype), cmat)            # (N*T2, N*T2)
        y = _ffn_dense_call(x_in, wbd, bbd, cbd, bconv, bblk=bblk)
    else:
        x_in = X.reshape(B, N, T1).astype(compute_dtype)
        y = _ffn_rows_call(x_in, wd_t, bd, cmat, bconv, bblk=bblk)
    return y.reshape(B, N, 1, T2)


def stblock_fused(X, params, *, K, T2, bblk=None, compute_dtype=jnp.float32):
    """Returns (X_new [B,N,1,T2], S [B,N,N]) from one fused pallas_call.
    Use stblock_forward / stblock_ffn when S is not consumed."""
    B, N, C, T1 = X.shape
    assert C == 1, "STBlock_noGCN uses a single channel (C == 1)."
    wd_t, bd, cmat, bconv = _prep_ffn_weights(params, K, T2, compute_dtype)
    # Fold the scalar W3 into W2; keep all attention math in f32.
    w1 = params["W1"].reshape(1, T1).astype(jnp.float32)
    w23 = (params["W2"] * params["W3"][:, None]).reshape(1, T1).astype(jnp.float32)
    vst = params["Vs"].T.astype(jnp.float32)           # Vs^T
    bst = params["bs"].T.astype(jnp.float32)           # bs^T
    x3 = X.reshape(B, N, T1).astype(compute_dtype)

    if bblk is None:
        bblk = _choose_bblk(B, N, T1, T2, extra_lanes=N)
    bblk = _sanitize_bblk(B, bblk)
    grid = (B // bblk,)
    block_bytes = 4 * bblk * N * (T1 + T2 + N)
    weight_bytes = 4 * (w1.size + w23.size + vst.size + bst.size
                        + wd_t.size + bd.size + cmat.size)

    y2, st = pl.pallas_call(
        _fused_kernel,
        out_shape=(
            jax.ShapeDtypeStruct((B * N, T2), jnp.float32),
            jax.ShapeDtypeStruct((B * N, N), jnp.float32),
        ),
        grid_spec=pltpu.PrefetchScalarGridSpec(
            num_scalar_prefetch=0,
            grid=grid,
            in_specs=[
                pl.BlockSpec((bblk, N, T1), lambda b: (b, 0, 0)),        # x
                pl.BlockSpec((1, T1), lambda b: (0, 0)),                 # W1
                pl.BlockSpec((1, T1), lambda b: (0, 0)),                 # W2*W3
                pl.BlockSpec((N, N), lambda b: (0, 0)),                  # Vs^T
                pl.BlockSpec((N, N), lambda b: (0, 0)),                  # bs^T
                pl.BlockSpec((T1, T2), lambda b: (0, 0)),                # Wd^T
                pl.BlockSpec((1, T2), lambda b: (0, 0)),                 # bd
                pl.BlockSpec((T2, T2), lambda b: (0, 0)),                # conv band
                pl.BlockSpec(memory_space=pltpu.MemorySpace.SMEM),       # conv bias
            ],
            out_specs=[
                pl.BlockSpec((bblk * N, T2), lambda b: (b, 0)),          # X_new rows
                pl.BlockSpec((bblk * N, N), lambda b: (b, 0)),           # S^T rows
            ],
        ),
        compiler_params=_compiler_params(grid[0], block_bytes, weight_bytes),
    )(x3, w1, w23, vst, bst, wd_t, bd, cmat, bconv)

    X_new = y2.reshape(B, N, 1, T2)
    S = jnp.swapaxes(st.reshape(B, N, N), 1, 2)   # undo the transposed layout
    return X_new, S


def stblock_forward(X, A, params, *, K, T2, **kwargs):
    """Module-equivalent forward.  The PyTorch module computes S and
    A_hat = A * S but returns only X_new, which has no data dependence on
    them, so that dead attention work is skipped here (perf review)."""
    del A
    return stblock_ffn(X, params, K=K, T2=T2, **kwargs)


# ---------------------------------------------------------------------------
# Pure-JAX reference (mirrors the PyTorch forward) for correctness check
# ---------------------------------------------------------------------------
def reference_forward(X, A, params, *, K, T2):
    B, N, C, T1 = X.shape
    W1, W2, W3 = params["W1"], params["W2"], params["W3"]
    Vs, bs = params["Vs"], params["bs"]

    W1x = jnp.einsum("bnct,t->bnc", X, W1)
    W3x = jnp.einsum("c,bnct->bnt", W3, X)
    W1xW2 = jnp.einsum("bnc,ct->bnt", W1x, W2)
    _S = jnp.einsum("bit,bjt->bij", W1xW2, W3x) + bs[None]
    _S = jax.nn.softmax(_S, axis=1)
    _S = jnp.einsum("ij,bjk->bik", Vs, _S)
    S = jax.nn.softmax(_S, axis=1)

    X_hat = X.reshape(B, N, T1)
    X_new = jnp.einsum("bnt,ot->bno", X_hat, params["dummy_w"]) + params["dummy_b"]
    X_new = jax.nn.relu(X_new)
    pad = (K - 1) // 2
    xp = jnp.pad(X_new, ((0, 0), (0, 0), (pad, pad)))
    w = params["conv_w"].reshape(K)
    y = sum(w[k] * xp[..., k:k + T2] for k in range(K)) + params["conv_b"][0]
    y = jax.nn.relu(y)
    return y.reshape(B, N, 1, T2), S


def init_params(key, N, T1, T2, K):
    ks = jax.random.split(key, 9)
    xav = lambda k, shape: jax.random.uniform(
        k, shape, jnp.float32,
        -jnp.sqrt(6.0 / (shape[0] + shape[1])), jnp.sqrt(6.0 / (shape[0] + shape[1])))
    return {
        "Vs": xav(ks[0], (N, N)),
        "bs": xav(ks[1], (N, N)),
        "W1": jax.random.uniform(ks[2], (T1,), jnp.float32),
        "W2": xav(ks[3], (1, T1)),
        "W3": jax.random.uniform(ks[4], (1,), jnp.float32),
        "dummy_w": jax.random.uniform(ks[5], (T2, T1), jnp.float32,
                                      -1.0 / jnp.sqrt(T1), 1.0 / jnp.sqrt(T1)),
        "dummy_b": jax.random.uniform(ks[6], (T2,), jnp.float32,
                                      -1.0 / jnp.sqrt(T1), 1.0 / jnp.sqrt(T1)),
        "conv_w": jax.random.uniform(ks[7], (1, 1, K), jnp.float32,
                                     -1.0 / jnp.sqrt(K), 1.0 / jnp.sqrt(K)),
        "conv_b": jax.random.uniform(ks[8], (1,), jnp.float32,
                                     -1.0 / jnp.sqrt(K), 1.0 / jnp.sqrt(K)),
    }


if __name__ == "__main__":
    B, N, T1, T2, K = 2, 8, 16, 16, 3          # K must be odd (module assumes)

    key = jax.random.PRNGKey(0)
    kx, ka, kp = jax.random.split(key, 3)
    X = jax.random.normal(kx, (B, N, 1, T1), jnp.float32)
    A = jax.random.normal(ka, (N, N), jnp.float32)
    params = init_params(kp, N, T1, T2, K)

    # 1) Module-equivalent forward: FFN-only, lane-dense path, attention skipped.
    x_new = stblock_forward(X, A, params, K=K, T2=T2)
    # 2) Row-major FFN fallback path (used automatically when N*T is large).
    x_new_rows = stblock_ffn(X, params, K=K, T2=T2, dense=False)
    # 3) Fused kernel that also produces S (verifies the SpatialAtt branch).
    x_new_fused, S = stblock_fused(X, params, K=K, T2=T2)
    x_new, x_new_rows, x_new_fused, S = jax.block_until_ready(
        (x_new, x_new_rows, x_new_fused, S))

    ref_out, ref_S = reference_forward(X, A, params, K=K, T2=T2)

    assert x_new.shape == (B, N, 1, T2)
    assert jnp.allclose(x_new, ref_out, atol=1e-4, rtol=1e-4), "X_new (dense) mismatch"
    assert jnp.allclose(x_new_rows, ref_out, atol=1e-4, rtol=1e-4), "X_new (rows) mismatch"
    assert jnp.allclose(x_new_fused, ref_out, atol=1e-4, rtol=1e-4), "X_new (fused) mismatch"
    # S uses pl.reciprocal(approx=True) in both softmaxes -> slightly looser tol.
    assert jnp.allclose(S, ref_S, atol=2e-3, rtol=2e-3), "S mismatch"
    print("KERNEL_OK")
</pallas_src>

<mosaic_0001>
module attributes {stable_mosaic.version = 11 : i64} {
  func.func @_ffn_dense_kernel(%arg0: i32, %arg1: memref<2x128xf32, #tpu.memory_space<vmem>>, %arg2: memref<128x128xf32, #tpu.memory_space<vmem>>, %arg3: memref<1x128xf32, #tpu.memory_space<vmem>>, %arg4: memref<128x128xf32, #tpu.memory_space<vmem>>, %arg5: memref<1xf32, #tpu.memory_space<smem>>, %arg6: memref<2x128xf32, #tpu.memory_space<vmem>>) attributes {dimension_semantics = [#tpu.dimension_semantics<arbitrary>], iteration_bounds = array<i64: 1>, scalar_prefetch = 0 : i64, scratch_operands = 0 : i64, tpu.core_type = #tpu.core_type<tc>, window_params = [{transform_indices = @transform_0, window_bounds = array<i64: 2, 128>}, {pipeline_mode = #tpu.pipeline_mode<synchronous>, transform_indices = @transform_1, window_bounds = array<i64: 128, 128>}, {pipeline_mode = #tpu.pipeline_mode<synchronous>, transform_indices = @transform_2, window_bounds = array<i64: 1, 128>}, {pipeline_mode = #tpu.pipeline_mode<synchronous>, transform_indices = @transform_3, window_bounds = array<i64: 128, 128>}, {transform_indices = @transform_4, window_bounds = array<i64: 1>}, {transform_indices = @transform_5, window_bounds = array<i64: 2, 128>}]} {
    %c0 = arith.constant 0 : index
    %c0_0 = arith.constant 0 : index
    %0 = vector.load %arg1[%c0, %c0_0] : memref<2x128xf32, #tpu.memory_space<vmem>>, vector<2x128xf32>
    %c0_1 = arith.constant 0 : index
    %c0_2 = arith.constant 0 : index
    %1 = vector.load %arg2[%c0_1, %c0_2] : memref<128x128xf32, #tpu.memory_space<vmem>>, vector<128x128xf32>
    %c0_3 = arith.constant 0 : index
    %c0_4 = arith.constant 0 : index
    %2 = vector.load %arg3[%c0_3, %c0_4] : memref<1x128xf32, #tpu.memory_space<vmem>>, vector<1x128xf32>
    %c0_5 = arith.constant 0 : index
    %c0_6 = arith.constant 0 : index
    %3 = vector.load %arg4[%c0_5, %c0_6] : memref<128x128xf32, #tpu.memory_space<vmem>>, vector<128x128xf32>
    %c0_7 = arith.constant 0 : index
    %4 = memref.load %arg5[%c0_7] : memref<1xf32, #tpu.memory_space<smem>>
    %cst = arith.constant dense<0.000000e+00> : vector<2x128xf32>
    %5 = tpu.matmul %0, %1, %cst {dimension_numbers = #tpu.dot_dimension_numbers<[1], [0], [0], [1], [0, 0, 1, 1], [], []>} : vector<2x128xf32>, vector<128x128xf32>, vector<2x128xf32> -> vector<2x128xf32>
    %6 = vector.broadcast %2 : vector<1x128xf32> to vector<2x128xf32>
    %7 = arith.addf %5, %6 : vector<2x128xf32>
    %cst_8 = arith.constant 0.000000e+00 : f32
    %8 = vector.broadcast %cst_8 : f32 to vector<2x128xf32>
    %9 = arith.maximumf %7, %8 : vector<2x128xf32>
    %cst_9 = arith.constant dense<0.000000e+00> : vector<2x128xf32>
    %10 = tpu.matmul %9, %3, %cst_9 {dimension_numbers = #tpu.dot_dimension_numbers<[1], [0], [0], [1], [0, 0, 1, 1], [], []>} : vector<2x128xf32>, vector<128x128xf32>, vector<2x128xf32> -> vector<2x128xf32>
    %11 = vector.broadcast %4 : f32 to vector<2x128xf32>
    %12 = arith.addf %10, %11 : vector<2x128xf32>
    %cst_10 = arith.constant 0.000000e+00 : f32
    %13 = vector.broadcast %cst_10 : f32 to vector<2x128xf32>
    %14 = arith.maximumf %12, %13 : vector<2x128xf32>
    %c0_11 = arith.constant 0 : index
    %c0_12 = arith.constant 0 : index
    %15 = vector.load %arg6[%c0_11, %c0_12] : memref<2x128xf32, #tpu.memory_space<vmem>>, vector<2x128xf32>
    tpu.vector_store %arg6[%c0_11, %c0_12], %14 {strides = array<i32>} : memref<2x128xf32, #tpu.memory_space<vmem>>, vector<2x128xf32>,
    return
  }
  func.func @transform_0(%arg0: i32) -> (i32, i32) {
    %c0_i32 = arith.constant 0 : i32
    %c0_i32_0 = arith.constant 0 : i32
    return %arg0, %c0_i32 : i32, i32
  }
  func.func @transform_1(%arg0: i32) -> (i32, i32) {
    %c0_i32 = arith.constant 0 : i32
    %c0_i32_0 = arith.constant 0 : i32
    %c0_i32_1 = arith.constant 0 : i32
    return %c0_i32, %c0_i32_0 : i32, i32
  }
  func.func @transform_2(%arg0: i32) -> (i32, i32) {
    %c0_i32 = arith.constant 0 : i32
    %c0_i32_0 = arith.constant 0 : i32
    %c0_i32_1 = arith.constant 0 : i32
    return %c0_i32, %c0_i32_0 : i32, i32
  }
  func.func @transform_3(%arg0: i32) -> (i32, i32) {
    %c0_i32 = arith.constant 0 : i32
    %c0_i32_0 = arith.constant 0 : i32
    %c0_i32_1 = arith.constant 0 : i32
    return %c0_i32, %c0_i32_0 : i32, i32
  }
  func.func @transform_4(%arg0: i32) -> i32 {
    %c0_i32 = arith.constant 0 : i32
    %c0_i32_0 = arith.constant 0 : i32
    return %c0_i32 : i32
  }
  func.func @transform_5(%arg0: i32) -> (i32, i32) {
    %c0_i32 = arith.constant 0 : i32
    %c0_i32_0 = arith.constant 0 : i32
    return %arg0, %c0_i32 : i32, i32
  }
}

</mosaic_0001>

<bundles_post_ra>
// kernel: tpu_custom_call.1
= control target key start
LH: loop header
LB: loop body
LE: loop exit
PB: predicated region body
PF: predicated region fallthrough
CT: control target
= control target key end

     0   :  { %11 = vsyncpa [#allocation4], 0  ;;  %s583_s0 = inlined_call_operand.vmem [shape: f32[2,128], index: 0, kind: input, shape index: {}]   ;;  %s584_s1 = inlined_call_operand.hbm [shape: f32[128,128], index: 1, kind: input, shape index: {}]   ;;  %s585_s2 = inlined_call_operand.vmem [shape: f32[1,128], index: 2, kind: input, shape index: {}]   ;;  %s586_s3 = inlined_call_operand.hbm [shape: f32[128,128], index: 3, kind: input, shape index: {}]   ;;  %s587_s4 = inlined_call_operand.<no memory space> [shape: f32[1], index: 4, kind: input, shape index: {}]   ;;  %s588_s5 = inlined_call_operand.hbm [shape: f32[2,128], index: 5, kind: output, shape index: {}]  }
   0x1   :  { %12 = vsyncpa [#allocation7], 0 }
   0x2   :  { %13 = vsyncpa [#allocation5], 0  ;;  %s484_s18 = smov [#allocation3]   ;;  %s412_s22 = scalar_lea.hbm %s584_s1, 2048 }
   0x3   :  { %s21_s19 = sshll.u32 %s484_s18, 4  ;;  %p413_p0 = scmp.ne.s32.totalorder %s584_s1, %s412_s22  ;;  %s22_s19 = int_to_ptr.vmem [resolvable:$true] %s21_s19 }
   0x4   :  { %p416_p1 = scmp.lt.u32.totalorder %s412_s22, %s584_s1 }
   0x6   :  { %p418_p2 = pnand %p416_p1, %p413_p0 }
   0x8   :  { %421 = shalt.err (!%p418_p2)
}
   0x9   :  { %s422_s27 = scalar_lea.vmem %s22_s19, 2048  ;;  %p427_p4 = scmp.lt.s32.totalorder %s22_s19, %s22_s19 }
   0xa   :  { %p423_p3 = scmp.ne.s32.totalorder %s22_s19, %s422_s27  ;;  %p428_p5 = scmp.lt.s32.totalorder %s422_s27, %s422_s27 }
   0xc   :  { %p429_p6 = por %p428_p5, %p427_p4 }
   0xe   :  { %p430_p7 = pnand %p429_p6, %p423_p3 }
  0x10   :  { %433 = shalt.err (!%p430_p7)
}
  0x11   :  { %s485_s28 = smov 128   ;;  %s486_s29 = smov 8  }
  0x12   :  { %27 = dma.hbm_to_vmem [thread:$0]  %s584_s1, 2048, %s22_s19, [#allocation4], %s485_s28, %s485_s28, %s486_s29  }
  0x13   :  { %s487_s7 = smov [#allocation6]   ;;  %s434_s11 = scalar_lea.hbm %s586_s3, 2048 }
  0x14   :  { %s35_s8 = sshll.u32 %s487_s7, 4  ;;  %p435_p8 = scmp.ne.s32.totalorder %s586_s3, %s434_s11  ;;  %s36_s8 = int_to_ptr.vmem [resolvable:$true] %s35_s8 }
  0x15   :  { %p438_p9 = scmp.lt.u32.totalorder %s434_s11, %s586_s3 }
  0x17   :  { %p440_p10 = pnand %p438_p9, %p435_p8 }
  0x19   :  { %443 = shalt.err (!%p440_p10)
}
  0x1a   :  { %s444_s16 = scalar_lea.vmem %s36_s8, 2048  ;;  %p449_p12 = scmp.lt.s32.totalorder %s36_s8, %s36_s8 }
  0x1b   :  { %p445_p11 = scmp.ne.s32.totalorder %s36_s8, %s444_s16  ;;  %p450_p13 = scmp.lt.s32.totalorder %s444_s16, %s444_s16 }
  0x1d   :  { %p451_p0 = por %p450_p13, %p449_p12 }
  0x1f   :  { %p452_p1 = pnand %p451_p0, %p445_p11 }
  0x21   :  { %455 = shalt.err (!%p452_p1)
}
  0x22   :  { %41 = dma.hbm_to_vmem [thread:$0]  %s586_s3, 2048, %s36_s8, [#allocation7], %s485_s28, %s485_s28, %s486_s29  }
  0x23   :  { %478 = dma.done.wait [#allocation4], 2048  }
  0x24   :  { %479 = vsyncadd [#allocation4], 4294965248 }
  0x25   :  { %480 = dma.done.wait [#allocation7], 2048  }
  0x26   :  { %481 = vsyncadd [#allocation7], 4294965248  ;;  %v488_v0 = vmov 0.0|0.0   ;;  %vm489_vm0 = vmmov 0   ;;  %v490_v1 = vmov 0.0   ;;  %v51_v2 = vld [vmem:[#allocation3] sm:$0xff]  ;;  %v162_v56 = vstv %s587_s4 }
  0x27   :  { %356 = vmatprep.subr.bf16.mxu0 %v488_v0  ;;  %318 = vmatprep.mubr.msk.f32.mxu0 %vm489_vm0, %v490_v1  ;;  %v52_v3 = vld [vmem:[#allocation3 + $0x8] sm:$0xff]  ;;  %v53_v4 = vld [vmem:[#allocation3 + $0x10] sm:$0xff]  ;;  %v54_v6 = vld [vmem:[#allocation3 + $0x18] sm:$0xff] }
  0x28   :  { %380 = vmatprep.subr.bf16.mxu1 %v488_v0  ;;  %353 = vmatprep.mubr.msk.f32.mxu1 %vm489_vm0, %v490_v1  ;;  %v357_v5 = vpack.c.bf16 %v52_v3, %v51_v2  ;;  %v360_v7 = vpack.c.bf16 %v54_v6, %v53_v4  ;;  %v55_v8 = vld [vmem:[#allocation3 + $0x20] sm:$0xff]  ;;  %v56_v9 = vld [vmem:[#allocation3 + $0x28] sm:$0xff]  ;;  %v70_v12 = vld [vmem:[#allocation6 + $0x10] sm:$0xff] }
  0x29   :  { %v68_v10 = vld [vmem:[#allocation6] sm:$0xff]  ;;  %v69_v11 = vld [vmem:[#allocation6 + $0x8] sm:$0xff]  ;;  %v71_v13 = vld [vmem:[#allocation6 + $0x18] sm:$0xff]  ;;  %v363_v14 = vpack.c.bf16 %v56_v9, %v55_v8 }
  0x2a   :  { %358 = vmatpush3.bf16.msra.mxu0 %v357_v5  ;;  %v381_v15 = vpack.c.bf16 %v69_v11, %v68_v10  ;;  %v57_v16 = vld [vmem:[#allocation3 + $0x30] sm:$0xff]  ;;  %v58_v17 = vld [vmem:[#allocation3 + $0x38] sm:$0xff]  ;;  %v384_v18 = vpack.c.bf16 %v71_v13, %v70_v12  ;;  %v72_v19 = vld [vmem:[#allocation6 + $0x20] sm:$0xff] }
  0x2b   :  { %359 = vmatprep.subr.bf16.mxu0 %v488_v0  ;;  %v73_v20 = vld [vmem:[#allocation6 + $0x28] sm:$0xff]  ;;  %v366_v21 = vpack.c.bf16 %v58_v17, %v57_v16  ;;  %v59_v22 = vld [vmem:[#allocation3 + $0x40] sm:$0xff]  ;;  %v74_v25 = vld [vmem:[#allocation6 + $0x30] sm:$0xff] }
  0x2c   :  { %382 = vmatpush3.bf16.msra.mxu1 %v381_v15  ;;  %v60_v23 = vld [vmem:[#allocation3 + $0x48] sm:$0xff]  ;;  %v387_v24 = vpack.c.bf16 %v73_v20, %v72_v19  ;;  %v75_v26 = vld [vmem:[#allocation6 + $0x38] sm:$0xff]  ;;  %v61_v28 = vld [vmem:[#allocation3 + $0x50] sm:$0xff] }
  0x2d   :  { %383 = vmatprep.subr.bf16.mxu1 %v488_v0  ;;  %v369_v27 = vpack.c.bf16 %v60_v23, %v59_v22  ;;  %v62_v29 = vld [vmem:[#allocation3 + $0x58] sm:$0xff]  ;;  %v390_v30 = vpack.c.bf16 %v75_v26, %v74_v25  ;;  %v76_v31 = vld [vmem:[#allocation6 + $0x40] sm:$0xff]  ;;  %v77_v32 = vld [vmem:[#allocation6 + $0x48] sm:$0xff] }
  0x2e   :  { %361 = vmatpush3.bf16.msra.mxu0 %v360_v7  ;;  %v372_v33 = vpack.c.bf16 %v62_v29, %v61_v28  ;;  %v63_v34 = vld [vmem:[#allocation3 + $0x60] sm:$0xff]  ;;  %v64_v35 = vld [vmem:[#allocation3 + $0x68] sm:$0xff]  ;;  %v393_v36 = vpack.c.bf16 %v77_v32, %v76_v31  ;;  %v78_v37 = vld [vmem:[#allocation6 + $0x50] sm:$0xff] }
  0x2f   :  { %362 = vmatprep.subr.bf16.mxu0 %v488_v0  ;;  %v79_v38 = vld [vmem:[#allocation6 + $0x58] sm:$0xff]  ;;  %v375_v39 = vpack.c.bf16 %v64_v35, %v63_v34  ;;  %v65_v40 = vld [vmem:[#allocation3 + $0x70] sm:$0xff]  ;;  %v80_v43 = vld [vmem:[#allocation6 + $0x60] sm:$0xff] }
  0x30   :  { %385 = vmatpush3.bf16.msra.mxu1 %v384_v18  ;;  %v66_v41 = vld [vmem:[#allocation3 + $0x78] sm:$0xff]  ;;  %v396_v42 = vpack.c.bf16 %v79_v38, %v78_v37  ;;  %v81_v44 = vld [vmem:[#allocation6 + $0x68] sm:$0xff]  ;;  %v50_v47 = vld [vmem:[%s583_s0] sm:$0x3]  ;;  %s491_s0 = smov [#allocation8]  }
  0x31   :  { %386 = vmatprep.subr.bf16.mxu1 %v488_v0  ;;  %v378_v45 = vpack.c.bf16 %v66_v41, %v65_v40  ;;  %v399_v46 = vpack.c.bf16 %v81_v44, %v80_v43  ;;  %v82_v48 = vld [vmem:[#allocation6 + $0x70] sm:$0xff]  ;;  %v83_v49 = vld [vmem:[#allocation6 + $0x78] sm:$0xff]  ;;  %v251_v51 = vld [vmem:[%s585_s2] ss:$0 sm:$0xff]  ;;  %s241_s23 = sshll.u32 %s491_s0, 4  ;;  %s242_s23 = int_to_ptr.vmem [resolvable:$true] %s241_s23 }
  0x32   :  { %364 = vmatpush3.bf16.msra.mxu0 %v363_v14  ;;  %v402_v50 = vpack.c.bf16 %v83_v49, %v82_v48  ;;  %s456_s24 = scalar_lea.vmem %s242_s23, 32  ;;  %p461_p3 = scmp.lt.s32.totalorder %s242_s23, %s242_s23 }
  0x33   :  { %365 = vmatprep.subr.bf16.mxu0 %v488_v0  ;;  %p457_p2 = scmp.ne.s32.totalorder %s242_s23, %s456_s24  ;;  %p462_p4 = scmp.lt.s32.totalorder %s456_s24, %s456_s24 }
  0x34   :  { %388 = vmatpush3.bf16.msra.mxu1 %v387_v24 }
  0x35   :  { %389 = vmatprep.subr.bf16.mxu1 %v488_v0  ;;  %p463_p5 = por %p462_p4, %p461_p3 }
  0x36   :  { %367 = vmatpush3.bf16.msra.mxu0 %v366_v21 }
  0x37   :  { %368 = vmatprep.subr.bf16.mxu0 %v488_v0  ;;  %p464_p6 = pnand %p463_p5, %p457_p2 }
  0x38   :  { %391 = vmatpush3.bf16.msra.mxu1 %v390_v30 }
  0x39   :  { %392 = vmatprep.subr.bf16.mxu1 %v488_v0 }
  0x3a   :  { %370 = vmatpush3.bf16.msra.mxu0 %v369_v27 }
  0x3b   :  { %371 = vmatprep.subr.bf16.mxu0 %v488_v0 }
  0x3c   :  { %394 = vmatpush3.bf16.msra.mxu1 %v393_v36 }
  0x3d   :  { %395 = vmatprep.subr.bf16.mxu1 %v488_v0 }
  0x3e   :  { %373 = vmatpush3.bf16.msra.mxu0 %v372_v33 }
  0x3f   :  { %374 = vmatprep.subr.bf16.mxu0 %v488_v0 }
  0x40   :  { %397 = vmatpush3.bf16.msra.mxu1 %v396_v42 }
  0x41   :  { %398 = vmatprep.subr.bf16.mxu1 %v488_v0 }
  0x42   :  { %376 = vmatpush3.bf16.msra.mxu0 %v375_v39 }
  0x43   :  { %377 = vmatprep.subr.bf16.mxu0 %v488_v0 }
  0x44   :  { %400 = vmatpush3.bf16.msra.mxu1 %v399_v46 }
  0x45   :  { %401 = vmatprep.subr.bf16.mxu1 %v488_v0 }
  0x46   :  { %379 = vmatpush3.bf16.msra.mxu0 %v378_v45 }
  0x48   :  { %403 = vmatpush3.bf16.msra.mxu1 %v402_v50 }
  0x49   :  { %319 = vmatmul.mubr.f32.vlgmr.msra.gmra.mrb[0].mxu0 %v50_v47 }
 0x11c   :  { %v157_v52 = vpop.f32.mrb[0].mxu0 }
 0x11d   :  { %v158_v53 = vadd.f32 %v251_v51, %v157_v52  ;;  %v320_v54 = vpop.f32.mrb[1].mxu0 }
 0x11f   :  { %v161_v55 = vmax.f32 %v158_v53, 0.0 }
 0x121   :  { %354 = vmatmul.mubr.f32.vlgmr.msra.gmra.mrb[0].mxu1 %v161_v55 }
 0x1f4   :  { %v229_v57 = vpop.f32.mrb[0].mxu1 }
 0x1f5   :  { %v230_v58 = vadd.f32 %v229_v57, %v162_v56  ;;  %v355_v59 = vpop.f32.mrb[1].mxu1 }
 0x1f7   :  { %v233_v60 = vmax.f32 %v230_v58, 0.0 }
 0x1f9   :  { %234 = vst [vmem:[#allocation8] sm:$0x3] %v233_v60 }
 0x1fa   :  { %467 = shalt.err (!%p464_p6)
}
 0x1fb   :  { %s468_s26 = scalar_lea.hbm %s588_s5, 32 }
 0x1fc   :  { %p469_p7 = scmp.ne.s32.totalorder %s588_s5, %s468_s26  ;;  %p472_p8 = scmp.lt.u32.totalorder %s468_s26, %s588_s5 }
 0x1fe   :  { %p474_p9 = pnand %p472_p8, %p469_p7 }
 0x200   :  { %477 = shalt.err (!%p474_p9)
}
 0x201   :  { %244 = dma.vmem_to_hbm [thread:$0]  %s242_s23, 32, %s588_s5, [#allocation5]  }
 0x202   :  { %482 = dma.done.wait [#allocation5], 32  }
 0x203   :  { %483 = vsyncadd [#allocation5], 4294967264 }
 0x204   :  { %248 = vsyncpa [#allocation4], 1 }
 0x205   :  { %249 = vsyncpa [#allocation7], 1 }
 0x206   :  { %250 = vsyncpa [#allocation5], 1 }

</bundles_post_ra>
